<compile_context>
chip_gen: v7x
topology: tpu7x:2x2x1
jax: 0.10.0
libtpu: 0.0.40
codegen_flags: <defaults>
</compile_context>

<pallas_src>
import jax
import jax.numpy as jnp
from jax import lax
from jax.experimental import pallas as pl
from jax.experimental.pallas import tpu as pltpu


def lstm_fc_kernel(emb_ref, w_ref, b_ref, fcw_ref, fcb_ref, out_ref,
                   xh_scr, c_scr):
    """LSTM recurrence over the whole sequence + final FC, one invocation.

    emb_ref : (S, B, E)    embedded inputs (whole sequence in VMEM)
    w_ref   : (E+H, 4H)    stacked [W_ih^T ; W_hh^T], gate order [i, f, o, g]
    b_ref   : (1, 4H)      fused bias (b_ih + b_hh), same gate order
    fcw_ref : (H, O_pad)   fc weight^T, zero-padded to lane-dense width (>=128)
    fcb_ref : (1, O_pad)   fc bias, zero-padded
    out_ref : (B, O_pad)   lane-dense output block
    xh_scr  : (B, E+H)     [x_t || h_t] staging buffer -> single fused matmul
    c_scr   : (B, H)       cell state
    """
    S = emb_ref.shape[0]
    E = emb_ref.shape[-1]
    H = c_scr.shape[-1]

    # h_0 = c_0 = 0
    xh_scr[...] = jnp.zeros_like(xh_scr)
    c_scr[...] = jnp.zeros_like(c_scr)

    def step(t, carry):
        xh_scr[:, :E] = emb_ref[t]                       # load x_t into left half
        # one MXU push per step: [x || h] @ [W_ih^T ; W_hh^T]
        gates = (jnp.dot(xh_scr[...], w_ref[...],
                         preferred_element_type=jnp.float32)
                 + b_ref[...])                           # (B, 4H) order [i,f,o,g]

        sig = jax.nn.sigmoid(gates[:, :3 * H])           # i, f, o in one pass
        g_g = jnp.tanh(gates[:, 3 * H:])
        i_g = sig[:, 0 * H:1 * H]
        f_g = sig[:, 1 * H:2 * H]
        o_g = sig[:, 2 * H:3 * H]

        c_new = f_g * c_scr[...] + i_g * g_g
        h_new = o_g * jnp.tanh(c_new)

        c_scr[...] = c_new
        xh_scr[:, E:] = h_new                            # h feeds next step
        return carry

    lax.fori_loop(0, S, step, 0, unroll=True)

    h_fin = xh_scr[:, E:]                                # (B, H)
    out_ref[...] = (jnp.dot(h_fin, fcw_ref[...],
                            preferred_element_type=jnp.float32)
                    + fcb_ref[...])


def rnn_forward(text, emb_table, w_ih, w_hh, b_ih, b_hh, fc_w, fc_b):
    """text: (seq, batch) int32 token ids. Returns (batch, output_dim) float32."""
    S, B = text.shape
    E = emb_table.shape[1]
    H = w_hh.shape[1]                 # w_hh: (4H, H)
    O = fc_w.shape[0]                 # fc_w: (O, H)
    O_pad = max(128, ((O + 127) // 128) * 128)

    # --- glue: embedding gather, gate-order permutation, weight stacking, padding
    embedded = emb_table[text].astype(jnp.float32)                 # (S, B, E)

    # PyTorch gate order is [i, f, g, o]; permute to [i, f, o, g] so the three
    # sigmoid gates are lane-contiguous inside the kernel.
    perm = jnp.concatenate([jnp.arange(0, 2 * H),
                            jnp.arange(3 * H, 4 * H),
                            jnp.arange(2 * H, 3 * H)])
    w_stack = jnp.concatenate([w_ih[perm].T, w_hh[perm].T], axis=0)  # (E+H, 4H)
    bias = (b_ih + b_hh)[perm].reshape(1, 4 * H)                     # (1, 4H)

    fcw_pad = jnp.zeros((H, O_pad), jnp.float32).at[:, :O].set(fc_w.T)
    fcb_pad = jnp.zeros((1, O_pad), jnp.float32).at[:, :O].set(fc_b)

    out_pad = pl.pallas_call(
        lstm_fc_kernel,
        out_shape=jax.ShapeDtypeStruct((B, O_pad), jnp.float32),
        grid_spec=pltpu.PrefetchScalarGridSpec(
            num_scalar_prefetch=0,
            grid=(1,),                                     # single invocation
            in_specs=[
                pl.BlockSpec((S, B, E), lambda i: (0, 0, 0)),       # whole sequence
                pl.BlockSpec((E + H, 4 * H), lambda i: (0, 0)),     # stacked gate W
                pl.BlockSpec((1, 4 * H), lambda i: (0, 0)),         # fused bias
                pl.BlockSpec((H, O_pad), lambda i: (0, 0)),         # fc weight^T (padded)
                pl.BlockSpec((1, O_pad), lambda i: (0, 0)),         # fc bias (padded)
            ],
            out_specs=pl.BlockSpec((B, O_pad), lambda i: (0, 0)),
            scratch_shapes=[
                pltpu.VMEM((B, E + H), jnp.float32),   # [x || h]
                pltpu.VMEM((B, H), jnp.float32),       # c
            ],
        ),
        compiler_params=pltpu.CompilerParams(
            dimension_semantics=("arbitrary",)),
    )(embedded, w_stack, bias, fcw_pad, fcb_pad)

    return out_pad[:, :O]


def rnn_reference(text, emb_table, w_ih, w_hh, b_ih, b_hh, fc_w, fc_b):
    """Pure-JAX reference mirroring torch.nn.LSTM + Linear semantics."""
    embedded = emb_table[text]                       # (S, B, E)
    B = text.shape[1]
    H = w_hh.shape[1]

    def step(carry, x_t):
        h, c = carry
        gates = x_t @ w_ih.T + b_ih + h @ w_hh.T + b_hh
        i_g = jax.nn.sigmoid(gates[:, 0 * H:1 * H])
        f_g = jax.nn.sigmoid(gates[:, 1 * H:2 * H])
        g_g = jnp.tanh(gates[:, 2 * H:3 * H])
        o_g = jax.nn.sigmoid(gates[:, 3 * H:4 * H])
        c_new = f_g * c + i_g * g_g
        h_new = o_g * jnp.tanh(c_new)
        return (h_new, c_new), None

    h0 = jnp.zeros((B, H), jnp.float32)
    c0 = jnp.zeros((B, H), jnp.float32)
    (h_fin, _), _ = lax.scan(step, (h0, c0), embedded)
    return h_fin @ fc_w.T + fc_b


if __name__ == "__main__":
    # Module hyperparameters (small, consistent with the forward pass).
    input_dim = 64      # vocab size
    embedding_dim = 32
    hidden_dim = 32
    output_dim = 8
    seq_len = 8
    batch = 8

    key = jax.random.PRNGKey(0)
    ks = jax.random.split(key, 8)

    emb_table = jax.random.normal(ks[0], (input_dim, embedding_dim), jnp.float32) * 0.1
    w_ih = jax.random.normal(ks[1], (4 * hidden_dim, embedding_dim), jnp.float32) * 0.1
    w_hh = jax.random.normal(ks[2], (4 * hidden_dim, hidden_dim), jnp.float32) * 0.1
    b_ih = jax.random.normal(ks[3], (4 * hidden_dim,), jnp.float32) * 0.1
    b_hh = jax.random.normal(ks[4], (4 * hidden_dim,), jnp.float32) * 0.1
    fc_w = jax.random.normal(ks[5], (output_dim, hidden_dim), jnp.float32) * 0.1
    fc_b = jax.random.normal(ks[6], (output_dim,), jnp.float32) * 0.1

    text = jax.random.randint(ks[7], (seq_len, batch), 0, input_dim, jnp.int32)

    out = rnn_forward(text, emb_table, w_ih, w_hh, b_ih, b_hh, fc_w, fc_b)
    out = jax.block_until_ready(out)

    ref = rnn_reference(text, emb_table, w_ih, w_hh, b_ih, b_hh, fc_w, fc_b)
    assert out.shape == (batch, output_dim)
    assert jnp.allclose(out, ref, atol=1e-5, rtol=1e-5), "mismatch vs reference"

    print("KERNEL_OK")
</pallas_src>

<mosaic_0001>
module attributes {stable_mosaic.version = 11 : i64} {
  func.func @lstm_fc_kernel(%arg0: i32, %arg1: memref<8x8x32xf32, #tpu.memory_space<vmem>>, %arg2: memref<64x128xf32, #tpu.memory_space<vmem>>, %arg3: memref<1x128xf32, #tpu.memory_space<vmem>>, %arg4: memref<32x128xf32, #tpu.memory_space<vmem>>, %arg5: memref<1x128xf32, #tpu.memory_space<vmem>>, %arg6: memref<8x128xf32, #tpu.memory_space<vmem>>, %arg7: memref<8x64xf32, #tpu.memory_space<vmem>>, %arg8: memref<8x32xf32, #tpu.memory_space<vmem>>) attributes {dimension_semantics = [#tpu.dimension_semantics<arbitrary>], iteration_bounds = array<i64: 1>, scalar_prefetch = 0 : i64, scratch_operands = 2 : i64, tpu.core_type = #tpu.core_type<tc>, window_params = [{pipeline_mode = #tpu.pipeline_mode<synchronous>, transform_indices = @transform_0, window_bounds = array<i64: 8, 8, 32>}, {pipeline_mode = #tpu.pipeline_mode<synchronous>, transform_indices = @transform_1, window_bounds = array<i64: 64, 128>}, {pipeline_mode = #tpu.pipeline_mode<synchronous>, transform_indices = @transform_2, window_bounds = array<i64: 1, 128>}, {pipeline_mode = #tpu.pipeline_mode<synchronous>, transform_indices = @transform_3, window_bounds = array<i64: 32, 128>}, {pipeline_mode = #tpu.pipeline_mode<synchronous>, transform_indices = @transform_4, window_bounds = array<i64: 1, 128>}, {pipeline_mode = #tpu.pipeline_mode<synchronous>, transform_indices = @transform_5, window_bounds = array<i64: 8, 128>}]} {
    %cst = arith.constant 0.000000e+00 : f32
    %0 = vector.broadcast %cst : f32 to vector<8x64xf32>
    %c0 = arith.constant 0 : index
    %c0_0 = arith.constant 0 : index
    %1 = vector.load %arg7[%c0, %c0_0] : memref<8x64xf32, #tpu.memory_space<vmem>>, vector<8x64xf32>
    tpu.vector_store %arg7[%c0, %c0_0], %0 {strides = array<i32>} : memref<8x64xf32, #tpu.memory_space<vmem>>, vector<8x64xf32>,
    %cst_1 = arith.constant 0.000000e+00 : f32
    %2 = vector.broadcast %cst_1 : f32 to vector<8x32xf32>
    %c0_2 = arith.constant 0 : index
    %c0_3 = arith.constant 0 : index
    %3 = vector.load %arg8[%c0_2, %c0_3] : memref<8x32xf32, #tpu.memory_space<vmem>>, vector<8x32xf32>
    tpu.vector_store %arg8[%c0_2, %c0_3], %2 {strides = array<i32>} : memref<8x32xf32, #tpu.memory_space<vmem>>, vector<8x32xf32>,
    %c0_i32 = arith.constant 0 : i32
    %4 = arith.index_cast %c0_i32 : i32 to index
    %c0_4 = arith.constant 0 : index
    %c0_5 = arith.constant 0 : index
    %5 = vector.load %arg1[%4, %c0_4, %c0_5] : memref<8x8x32xf32, #tpu.memory_space<vmem>>, vector<1x8x32xf32>
    %6 = vector.shape_cast %5 : vector<1x8x32xf32> to vector<8x32xf32>
    %c0_6 = arith.constant 0 : index
    %c0_7 = arith.constant 0 : index
    %7 = vector.load %arg7[%c0_6, %c0_7] : memref<8x64xf32, #tpu.memory_space<vmem>>, vector<8x32xf32>
    tpu.vector_store %arg7[%c0_6, %c0_7], %6 {strides = array<i32>} : memref<8x64xf32, #tpu.memory_space<vmem>>, vector<8x32xf32>,
    %c0_8 = arith.constant 0 : index
    %c0_9 = arith.constant 0 : index
    %8 = vector.load %arg7[%c0_8, %c0_9] : memref<8x64xf32, #tpu.memory_space<vmem>>, vector<8x64xf32>
    %c0_10 = arith.constant 0 : index
    %c0_11 = arith.constant 0 : index
    %9 = vector.load %arg2[%c0_10, %c0_11] : memref<64x128xf32, #tpu.memory_space<vmem>>, vector<64x128xf32>
    %cst_12 = arith.constant dense<0.000000e+00> : vector<8x128xf32>
    %10 = tpu.matmul %8, %9, %cst_12 {dimension_numbers = #tpu.dot_dimension_numbers<[1], [0], [0], [1], [0, 0, 1, 1], [], []>} : vector<8x64xf32>, vector<64x128xf32>, vector<8x128xf32> -> vector<8x128xf32>
    %c0_13 = arith.constant 0 : index
    %c0_14 = arith.constant 0 : index
    %11 = vector.load %arg3[%c0_13, %c0_14] : memref<1x128xf32, #tpu.memory_space<vmem>>, vector<1x128xf32>
    %12 = vector.broadcast %11 : vector<1x128xf32> to vector<8x128xf32>
    %13 = arith.addf %10, %12 : vector<8x128xf32>
    %14 = vector.extract_strided_slice %13 {offsets = [0, 0], sizes = [8, 96], strides = [1, 1]} : vector<8x128xf32> to vector<8x96xf32>
    %15 = arith.negf %14 : vector<8x96xf32>
    %16 = math.exp %15 : vector<8x96xf32>
    %cst_15 = arith.constant 1.000000e+00 : f32
    %17 = vector.broadcast %cst_15 : f32 to vector<8x96xf32>
    %18 = arith.addf %17, %16 : vector<8x96xf32>
    %19 = arith.divf %17, %18 : vector<8x96xf32>
    %20 = vector.extract_strided_slice %13 {offsets = [0, 96], sizes = [8, 32], strides = [1, 1]} : vector<8x128xf32> to vector<8x32xf32>
    %21 = math.tanh %20 : vector<8x32xf32>
    %22 = vector.extract_strided_slice %19 {offsets = [0, 0], sizes = [8, 32], strides = [1, 1]} : vector<8x96xf32> to vector<8x32xf32>
    %23 = vector.extract_strided_slice %19 {offsets = [0, 32], sizes = [8, 32], strides = [1, 1]} : vector<8x96xf32> to vector<8x32xf32>
    %24 = vector.extract_strided_slice %19 {offsets = [0, 64], sizes = [8, 32], strides = [1, 1]} : vector<8x96xf32> to vector<8x32xf32>
    %c0_16 = arith.constant 0 : index
    %c0_17 = arith.constant 0 : index
    %25 = vector.load %arg8[%c0_16, %c0_17] : memref<8x32xf32, #tpu.memory_space<vmem>>, vector<8x32xf32>
    %26 = arith.mulf %23, %25 : vector<8x32xf32>
    %27 = arith.mulf %22, %21 : vector<8x32xf32>
    %28 = arith.addf %26, %27 : vector<8x32xf32>
    %29 = math.tanh %28 : vector<8x32xf32>
    %30 = arith.mulf %24, %29 : vector<8x32xf32>
    %c0_18 = arith.constant 0 : index
    %c0_19 = arith.constant 0 : index
    %31 = vector.load %arg8[%c0_18, %c0_19] : memref<8x32xf32, #tpu.memory_space<vmem>>, vector<8x32xf32>
    tpu.vector_store %arg8[%c0_18, %c0_19], %28 {strides = array<i32>} : memref<8x32xf32, #tpu.memory_space<vmem>>, vector<8x32xf32>,
    %c0_20 = arith.constant 0 : index
    %c32 = arith.constant 32 : index
    %32 = vector.load %arg7[%c0_20, %c32] : memref<8x64xf32, #tpu.memory_space<vmem>>, vector<8x32xf32>
    tpu.vector_store %arg7[%c0_20, %c32], %30 {strides = array<i32>} : memref<8x64xf32, #tpu.memory_space<vmem>>, vector<8x32xf32>,
    %c1_i32 = arith.constant 1 : i32
    %33 = arith.index_cast %c1_i32 : i32 to index
    %c0_21 = arith.constant 0 : index
    %c0_22 = arith.constant 0 : index
    %34 = vector.load %arg1[%33, %c0_21, %c0_22] : memref<8x8x32xf32, #tpu.memory_space<vmem>>, vector<1x8x32xf32>
    %35 = vector.shape_cast %34 : vector<1x8x32xf32> to vector<8x32xf32>
    %c0_23 = arith.constant 0 : index
    %c0_24 = arith.constant 0 : index
    %36 = vector.load %arg7[%c0_23, %c0_24] : memref<8x64xf32, #tpu.memory_space<vmem>>, vector<8x32xf32>
    tpu.vector_store %arg7[%c0_23, %c0_24], %35 {strides = array<i32>} : memref<8x64xf32, #tpu.memory_space<vmem>>, vector<8x32xf32>,
    %c0_25 = arith.constant 0 : index
    %c0_26 = arith.constant 0 : index
    %37 = vector.load %arg7[%c0_25, %c0_26] : memref<8x64xf32, #tpu.memory_space<vmem>>, vector<8x64xf32>
    %c0_27 = arith.constant 0 : index
    %c0_28 = arith.constant 0 : index
    %38 = vector.load %arg2[%c0_27, %c0_28] : memref<64x128xf32, #tpu.memory_space<vmem>>, vector<64x128xf32>
    %cst_29 = arith.constant dense<0.000000e+00> : vector<8x128xf32>
    %39 = tpu.matmul %37, %38, %cst_29 {dimension_numbers = #tpu.dot_dimension_numbers<[1], [0], [0], [1], [0, 0, 1, 1], [], []>} : vector<8x64xf32>, vector<64x128xf32>, vector<8x128xf32> -> vector<8x128xf32>
    %c0_30 = arith.constant 0 : index
    %c0_31 = arith.constant 0 : index
    %40 = vector.load %arg3[%c0_30, %c0_31] : memref<1x128xf32, #tpu.memory_space<vmem>>, vector<1x128xf32>
    %41 = vector.broadcast %40 : vector<1x128xf32> to vector<8x128xf32>
    %42 = arith.addf %39, %41 : vector<8x128xf32>
    %43 = vector.extract_strided_slice %42 {offsets = [0, 0], sizes = [8, 96], strides = [1, 1]} : vector<8x128xf32> to vector<8x96xf32>
    %44 = arith.negf %43 : vector<8x96xf32>
    %45 = math.exp %44 : vector<8x96xf32>
    %cst_32 = arith.constant 1.000000e+00 : f32
    %46 = vector.broadcast %cst_32 : f32 to vector<8x96xf32>
    %47 = arith.addf %46, %45 : vector<8x96xf32>
    %48 = arith.divf %46, %47 : vector<8x96xf32>
    %49 = vector.extract_strided_slice %42 {offsets = [0, 96], sizes = [8, 32], strides = [1, 1]} : vector<8x128xf32> to vector<8x32xf32>
    %50 = math.tanh %49 : vector<8x32xf32>
    %51 = vector.extract_strided_slice %48 {offsets = [0, 0], sizes = [8, 32], strides = [1, 1]} : vector<8x96xf32> to vector<8x32xf32>
    %52 = vector.extract_strided_slice %48 {offsets = [0, 32], sizes = [8, 32], strides = [1, 1]} : vector<8x96xf32> to vector<8x32xf32>
    %53 = vector.extract_strided_slice %48 {offsets = [0, 64], sizes = [8, 32], strides = [1, 1]} : vector<8x96xf32> to vector<8x32xf32>
    %c0_33 = arith.constant 0 : index
    %c0_34 = arith.constant 0 : index
    %54 = vector.load %arg8[%c0_33, %c0_34] : memref<8x32xf32, #tpu.memory_space<vmem>>, vector<8x32xf32>
    %55 = arith.mulf %52, %54 : vector<8x32xf32>
    %56 = arith.mulf %51, %50 : vector<8x32xf32>
    %57 = arith.addf %55, %56 : vector<8x32xf32>
    %58 = math.tanh %57 : vector<8x32xf32>
    %59 = arith.mulf %53, %58 : vector<8x32xf32>
    %c0_35 = arith.constant 0 : index
    %c0_36 = arith.constant 0 : index
    %60 = vector.load %arg8[%c0_35, %c0_36] : memref<8x32xf32, #tpu.memory_space<vmem>>, vector<8x32xf32>
    tpu.vector_store %arg8[%c0_35, %c0_36], %57 {strides = array<i32>} : memref<8x32xf32, #tpu.memory_space<vmem>>, vector<8x32xf32>,
    %c0_37 = arith.constant 0 : index
    %c32_38 = arith.constant 32 : index
    %61 = vector.load %arg7[%c0_37, %c32_38] : memref<8x64xf32, #tpu.memory_space<vmem>>, vector<8x32xf32>
    tpu.vector_store %arg7[%c0_37, %c32_38], %59 {strides = array<i32>} : memref<8x64xf32, #tpu.memory_space<vmem>>, vector<8x32xf32>,
    %c2_i32 = arith.constant 2 : i32
    %62 = arith.index_cast %c2_i32 : i32 to index
    %c0_39 = arith.constant 0 : index
    %c0_40 = arith.constant 0 : index
    %63 = vector.load %arg1[%62, %c0_39, %c0_40] : memref<8x8x32xf32, #tpu.memory_space<vmem>>, vector<1x8x32xf32>
    %64 = vector.shape_cast %63 : vector<1x8x32xf32> to vector<8x32xf32>
    %c0_41 = arith.constant 0 : index
    %c0_42 = arith.constant 0 : index
    %65 = vector.load %arg7[%c0_41, %c0_42] : memref<8x64xf32, #tpu.memory_space<vmem>>, vector<8x32xf32>
    tpu.vector_store %arg7[%c0_41, %c0_42], %64 {strides = array<i32>} : memref<8x64xf32, #tpu.memory_space<vmem>>, vector<8x32xf32>,
    %c0_43 = arith.constant 0 : index
    %c0_44 = arith.constant 0 : index
    %66 = vector.load %arg7[%c0_43, %c0_44] : memref<8x64xf32, #tpu.memory_space<vmem>>, vector<8x64xf32>
    %c0_45 = arith.constant 0 : index
    %c0_46 = arith.constant 0 : index
    %67 = vector.load %arg2[%c0_45, %c0_46] : memref<64x128xf32, #tpu.memory_space<vmem>>, vector<64x128xf32>
    %cst_47 = arith.constant dense<0.000000e+00> : vector<8x128xf32>
    %68 = tpu.matmul %66, %67, %cst_47 {dimension_numbers = #tpu.dot_dimension_numbers<[1], [0], [0], [1], [0, 0, 1, 1], [], []>} : vector<8x64xf32>, vector<64x128xf32>, vector<8x128xf32> -> vector<8x128xf32>
    %c0_48 = arith.constant 0 : index
    %c0_49 = arith.constant 0 : index
    %69 = vector.load %arg3[%c0_48, %c0_49] : memref<1x128xf32, #tpu.memory_space<vmem>>, vector<1x128xf32>
    %70 = vector.broadcast %69 : vector<1x128xf32> to vector<8x128xf32>
    %71 = arith.addf %68, %70 : vector<8x128xf32>
    %72 = vector.extract_strided_slice %71 {offsets = [0, 0], sizes = [8, 96], strides = [1, 1]} : vector<8x128xf32> to vector<8x96xf32>
    %73 = arith.negf %72 : vector<8x96xf32>
    %74 = math.exp %73 : vector<8x96xf32>
    %cst_50 = arith.constant 1.000000e+00 : f32
    %75 = vector.broadcast %cst_50 : f32 to vector<8x96xf32>
    %76 = arith.addf %75, %74 : vector<8x96xf32>
    %77 = arith.divf %75, %76 : vector<8x96xf32>
    %78 = vector.extract_strided_slice %71 {offsets = [0, 96], sizes = [8, 32], strides = [1, 1]} : vector<8x128xf32> to vector<8x32xf32>
    %79 = math.tanh %78 : vector<8x32xf32>
    %80 = vector.extract_strided_slice %77 {offsets = [0, 0], sizes = [8, 32], strides = [1, 1]} : vector<8x96xf32> to vector<8x32xf32>
    %81 = vector.extract_strided_slice %77 {offsets = [0, 32], sizes = [8, 32], strides = [1, 1]} : vector<8x96xf32> to vector<8x32xf32>
    %82 = vector.extract_strided_slice %77 {offsets = [0, 64], sizes = [8, 32], strides = [1, 1]} : vector<8x96xf32> to vector<8x32xf32>
    %c0_51 = arith.constant 0 : index
    %c0_52 = arith.constant 0 : index
    %83 = vector.load %arg8[%c0_51, %c0_52] : memref<8x32xf32, #tpu.memory_space<vmem>>, vector<8x32xf32>
    %84 = arith.mulf %81, %83 : vector<8x32xf32>
    %85 = arith.mulf %80, %79 : vector<8x32xf32>
    %86 = arith.addf %84, %85 : vector<8x32xf32>
    %87 = math.tanh %86 : vector<8x32xf32>
    %88 = arith.mulf %82, %87 : vector<8x32xf32>
    %c0_53 = arith.constant 0 : index
    %c0_54 = arith.constant 0 : index
    %89 = vector.load %arg8[%c0_53, %c0_54] : memref<8x32xf32, #tpu.memory_space<vmem>>, vector<8x32xf32>
    tpu.vector_store %arg8[%c0_53, %c0_54], %86 {strides = array<i32>} : memref<8x32xf32, #tpu.memory_space<vmem>>, vector<8x32xf32>,
    %c0_55 = arith.constant 0 : index
    %c32_56 = arith.constant 32 : index
    %90 = vector.load %arg7[%c0_55, %c32_56] : memref<8x64xf32, #tpu.memory_space<vmem>>, vector<8x32xf32>
    tpu.vector_store %arg7[%c0_55, %c32_56], %88 {strides = array<i32>} : memref<8x64xf32, #tpu.memory_space<vmem>>, vector<8x32xf32>,
    %c3_i32 = arith.constant 3 : i32
    %91 = arith.index_cast %c3_i32 : i32 to index
    %c0_57 = arith.constant 0 : index
    %c0_58 = arith.constant 0 : index
    %92 = vector.load %arg1[%91, %c0_57, %c0_58] : memref<8x8x32xf32, #tpu.memory_space<vmem>>, vector<1x8x32xf32>
    %93 = vector.shape_cast %92 : vector<1x8x32xf32> to vector<8x32xf32>
    %c0_59 = arith.constant 0 : index
    %c0_60 = arith.constant 0 : index
    %94 = vector.load %arg7[%c0_59, %c0_60] : memref<8x64xf32, #tpu.memory_space<vmem>>, vector<8x32xf32>
    tpu.vector_store %arg7[%c0_59, %c0_60], %93 {strides = array<i32>} : memref<8x64xf32, #tpu.memory_space<vmem>>, vector<8x32xf32>,
    %c0_61 = arith.constant 0 : index
    %c0_62 = arith.constant 0 : index
    %95 = vector.load %arg7[%c0_61, %c0_62] : memref<8x64xf32, #tpu.memory_space<vmem>>, vector<8x64xf32>
    %c0_63 = arith.constant 0 : index
    %c0_64 = arith.constant 0 : index
    %96 = vector.load %arg2[%c0_63, %c0_64] : memref<64x128xf32, #tpu.memory_space<vmem>>, vector<64x128xf32>
    %cst_65 = arith.constant dense<0.000000e+00> : vector<8x128xf32>
    %97 = tpu.matmul %95, %96, %cst_65 {dimension_numbers = #tpu.dot_dimension_numbers<[1], [0], [0], [1], [0, 0, 1, 1], [], []>} : vector<8x64xf32>, vector<64x128xf32>, vector<8x128xf32> -> vector<8x128xf32>
    %c0_66 = arith.constant 0 : index
    %c0_67 = arith.constant 0 : index
    %98 = vector.load %arg3[%c0_66, %c0_67] : memref<1x128xf32, #tpu.memory_space<vmem>>, vector<1x128xf32>
    %99 = vector.broadcast %98 : vector<1x128xf32> to vector<8x128xf32>
    %100 = arith.addf %97, %99 : vector<8x128xf32>
    %101 = vector.extract_strided_slice %100 {offsets = [0, 0], sizes = [8, 96], strides = [1, 1]} : vector<8x128xf32> to vector<8x96xf32>
    %102 = arith.negf %101 : vector<8x96xf32>
    %103 = math.exp %102 : vector<8x96xf32>
    %cst_68 = arith.constant 1.000000e+00 : f32
    %104 = vector.broadcast %cst_68 : f32 to vector<8x96xf32>
    %105 = arith.addf %104, %103 : vector<8x96xf32>
    %106 = arith.divf %104, %105 : vector<8x96xf32>
    %107 = vector.extract_strided_slice %100 {offsets = [0, 96], sizes = [8, 32], strides = [1, 1]} : vector<8x128xf32> to vector<8x32xf32>
    %108 = math.tanh %107 : vector<8x32xf32>
    %109 = vector.extract_strided_slice %106 {offsets = [0, 0], sizes = [8, 32], strides = [1, 1]} : vector<8x96xf32> to vector<8x32xf32>
    %110 = vector.extract_strided_slice %106 {offsets = [0, 32], sizes = [8, 32], strides = [1, 1]} : vector<8x96xf32> to vector<8x32xf32>
    %111 = vector.extract_strided_slice %106 {offsets = [0, 64], sizes = [8, 32], strides = [1, 1]} : vector<8x96xf32> to vector<8x32xf32>
    %c0_69 = arith.constant 0 : index
    %c0_70 = arith.constant 0 : index
    %112 = vector.load %arg8[%c0_69, %c0_70] : memref<8x32xf32, #tpu.memory_space<vmem>>, vector<8x32xf32>
    %113 = arith.mulf %110, %112 : vector<8x32xf32>
    %114 = arith.mulf %109, %108 : vector<8x32xf32>
    %115 = arith.addf %113, %114 : vector<8x32xf32>
    %116 = math.tanh %115 : vector<8x32xf32>
    %117 = arith.mulf %111, %116 : vector<8x32xf32>
    %c0_71 = arith.constant 0 : index
    %c0_72 = arith.constant 0 : index
    %118 = vector.load %arg8[%c0_71, %c0_72] : memref<8x32xf32, #tpu.memory_space<vmem>>, vector<8x32xf32>
    tpu.vector_store %arg8[%c0_71, %c0_72], %115 {strides = array<i32>} : memref<8x32xf32, #tpu.memory_space<vmem>>, vector<8x32xf32>,
    %c0_73 = arith.constant 0 : index
    %c32_74 = arith.constant 32 : index
    %119 = vector.load %arg7[%c0_73, %c32_74] : memref<8x64xf32, #tpu.memory_space<vmem>>, vector<8x32xf32>
    tpu.vector_store %arg7[%c0_73, %c32_74], %117 {strides = array<i32>} : memref<8x64xf32, #tpu.memory_space<vmem>>, vector<8x32xf32>,
    %c4_i32 = arith.constant 4 : i32
    %120 = arith.index_cast %c4_i32 : i32 to index
    %c0_75 = arith.constant 0 : index
    %c0_76 = arith.constant 0 : index
    %121 = vector.load %arg1[%120, %c0_75, %c0_76] : memref<8x8x32xf32, #tpu.memory_space<vmem>>, vector<1x8x32xf32>
    %122 = vector.shape_cast %121 : vector<1x8x32xf32> to vector<8x32xf32>
    %c0_77 = arith.constant 0 : index
    %c0_78 = arith.constant 0 : index
    %123 = vector.load %arg7[%c0_77, %c0_78] : memref<8x64xf32, #tpu.memory_space<vmem>>, vector<8x32xf32>
    tpu.vector_store %arg7[%c0_77, %c0_78], %122 {strides = array<i32>} : memref<8x64xf32, #tpu.memory_space<vmem>>, vector<8x32xf32>,
    %c0_79 = arith.constant 0 : index
    %c0_80 = arith.constant 0 : index
    %124 = vector.load %arg7[%c0_79, %c0_80] : memref<8x64xf32, #tpu.memory_space<vmem>>, vector<8x64xf32>
    %c0_81 = arith.constant 0 : index
    %c0_82 = arith.constant 0 : index
    %125 = vector.load %arg2[%c0_81, %c0_82] : memref<64x128xf32, #tpu.memory_space<vmem>>, vector<64x128xf32>
    %cst_83 = arith.constant dense<0.000000e+00> : vector<8x128xf32>
    %126 = tpu.matmul %124, %125, %cst_83 {dimension_numbers = #tpu.dot_dimension_numbers<[1], [0], [0], [1], [0, 0, 1, 1], [], []>} : vector<8x64xf32>, vector<64x128xf32>, vector<8x128xf32> -> vector<8x128xf32>
    %c0_84 = arith.constant 0 : index
    %c0_85 = arith.constant 0 : index
    %127 = vector.load %arg3[%c0_84, %c0_85] : memref<1x128xf32, #tpu.memory_space<vmem>>, vector<1x128xf32>
    %128 = vector.broadcast %127 : vector<1x128xf32> to vector<8x128xf32>
    %129 = arith.addf %126, %128 : vector<8x128xf32>
    %130 = vector.extract_strided_slice %129 {offsets = [0, 0], sizes = [8, 96], strides = [1, 1]} : vector<8x128xf32> to vector<8x96xf32>
    %131 = arith.negf %130 : vector<8x96xf32>
    %132 = math.exp %131 : vector<8x96xf32>
    %cst_86 = arith.constant 1.000000e+00 : f32
    %133 = vector.broadcast %cst_86 : f32 to vector<8x96xf32>
    %134 = arith.addf %133, %132 : vector<8x96xf32>
    %135 = arith.divf %133, %134 : vector<8x96xf32>
    %136 = vector.extract_strided_slice %129 {offsets = [0, 96], sizes = [8, 32], strides = [1, 1]} : vector<8x128xf32> to vector<8x32xf32>
    %137 = math.tanh %136 : vector<8x32xf32>
    %138 = vector.extract_strided_slice %135 {offsets = [0, 0], sizes = [8, 32], strides = [1, 1]} : vector<8x96xf32> to vector<8x32xf32>
    %139 = vector.extract_strided_slice %135 {offsets = [0, 32], sizes = [8, 32], strides = [1, 1]} : vector<8x96xf32> to vector<8x32xf32>
    %140 = vector.extract_strided_slice %135 {offsets = [0, 64], sizes = [8, 32], strides = [1, 1]} : vector<8x96xf32> to vector<8x32xf32>
    %c0_87 = arith.constant 0 : index
    %c0_88 = arith.constant 0 : index
    %141 = vector.load %arg8[%c0_87, %c0_88] : memref<8x32xf32, #tpu.memory_space<vmem>>, vector<8x32xf32>
    %142 = arith.mulf %139, %141 : vector<8x32xf32>
    %143 = arith.mulf %138, %137 : vector<8x32xf32>
    %144 = arith.addf %142, %143 : vector<8x32xf32>
    %145 = math.tanh %144 : vector<8x32xf32>
    %146 = arith.mulf %140, %145 : vector<8x32xf32>
    %c0_89 = arith.constant 0 : index
    %c0_90 = arith.constant 0 : index
    %147 = vector.load %arg8[%c0_89, %c0_90] : memref<8x32xf32, #tpu.memory_space<vmem>>, vector<8x32xf32>
    tpu.vector_store %arg8[%c0_89, %c0_90], %144 {strides = array<i32>} : memref<8x32xf32, #tpu.memory_space<vmem>>, vector<8x32xf32>,
    %c0_91 = arith.constant 0 : index
    %c32_92 = arith.constant 32 : index
    %148 = vector.load %arg7[%c0_91, %c32_92] : memref<8x64xf32, #tpu.memory_space<vmem>>, vector<8x32xf32>
    tpu.vector_store %arg7[%c0_91, %c32_92], %146 {strides = array<i32>} : memref<8x64xf32, #tpu.memory_space<vmem>>, vector<8x32xf32>,
    %c5_i32 = arith.constant 5 : i32
    %149 = arith.index_cast %c5_i32 : i32 to index
    %c0_93 = arith.constant 0 : index
    %c0_94 = arith.constant 0 : index
    %150 = vector.load %arg1[%149, %c0_93, %c0_94] : memref<8x8x32xf32, #tpu.memory_space<vmem>>, vector<1x8x32xf32>
    %151 = vector.shape_cast %150 : vector<1x8x32xf32> to vector<8x32xf32>
    %c0_95 = arith.constant 0 : index
    %c0_96 = arith.constant 0 : index
    %152 = vector.load %arg7[%c0_95, %c0_96] : memref<8x64xf32, #tpu.memory_space<vmem>>, vector<8x32xf32>
    tpu.vector_store %arg7[%c0_95, %c0_96], %151 {strides = array<i32>} : memref<8x64xf32, #tpu.memory_space<vmem>>, vector<8x32xf32>,
    %c0_97 = arith.constant 0 : index
    %c0_98 = arith.constant 0 : index
    %153 = vector.load %arg7[%c0_97, %c0_98] : memref<8x64xf32, #tpu.memory_space<vmem>>, vector<8x64xf32>
    %c0_99 = arith.constant 0 : index
    %c0_100 = arith.constant 0 : index
    %154 = vector.load %arg2[%c0_99, %c0_100] : memref<64x128xf32, #tpu.memory_space<vmem>>, vector<64x128xf32>
    %cst_101 = arith.constant dense<0.000000e+00> : vector<8x128xf32>
    %155 = tpu.matmul %153, %154, %cst_101 {dimension_numbers = #tpu.dot_dimension_numbers<[1], [0], [0], [1], [0, 0, 1, 1], [], []>} : vector<8x64xf32>, vector<64x128xf32>, vector<8x128xf32> -> vector<8x128xf32>
    %c0_102 = arith.constant 0 : index
    %c0_103 = arith.constant 0 : index
    %156 = vector.load %arg3[%c0_102, %c0_103] : memref<1x128xf32, #tpu.memory_space<vmem>>, vector<1x128xf32>
    %157 = vector.broadcast %156 : vector<1x128xf32> to vector<8x128xf32>
    %158 = arith.addf %155, %157 : vector<8x128xf32>
    %159 = vector.extract_strided_slice %158 {offsets = [0, 0], sizes = [8, 96], strides = [1, 1]} : vector<8x128xf32> to vector<8x96xf32>
    %160 = arith.negf %159 : vector<8x96xf32>
    %161 = math.exp %160 : vector<8x96xf32>
    %cst_104 = arith.constant 1.000000e+00 : f32
    %162 = vector.broadcast %cst_104 : f32 to vector<8x96xf32>
    %163 = arith.addf %162, %161 : vector<8x96xf32>
    %164 = arith.divf %162, %163 : vector<8x96xf32>
    %165 = vector.extract_strided_slice %158 {offsets = [0, 96], sizes = [8, 32], strides = [1, 1]} : vector<8x128xf32> to vector<8x32xf32>
    %166 = math.tanh %165 : vector<8x32xf32>
    %167 = vector.extract_strided_slice %164 {offsets = [0, 0], sizes = [8, 32], strides = [1, 1]} : vector<8x96xf32> to vector<8x32xf32>
    %168 = vector.extract_strided_slice %164 {offsets = [0, 32], sizes = [8, 32], strides = [1, 1]} : vector<8x96xf32> to vector<8x32xf32>
    %169 = vector.extract_strided_slice %164 {offsets = [0, 64], sizes = [8, 32], strides = [1, 1]} : vector<8x96xf32> to vector<8x32xf32>
    %c0_105 = arith.constant 0 : index
    %c0_106 = arith.constant 0 : index
    %170 = vector.load %arg8[%c0_105, %c0_106] : memref<8x32xf32, #tpu.memory_space<vmem>>, vector<8x32xf32>
    %171 = arith.mulf %168, %170 : vector<8x32xf32>
    %172 = arith.mulf %167, %166 : vector<8x32xf32>
    %173 = arith.addf %171, %172 : vector<8x32xf32>
    %174 = math.tanh %173 : vector<8x32xf32>
    %175 = arith.mulf %169, %174 : vector<8x32xf32>
    %c0_107 = arith.constant 0 : index
    %c0_108 = arith.constant 0 : index
    %176 = vector.load %arg8[%c0_107, %c0_108] : memref<8x32xf32, #tpu.memory_space<vmem>>, vector<8x32xf32>
    tpu.vector_store %arg8[%c0_107, %c0_108], %173 {strides = array<i32>} : memref<8x32xf32, #tpu.memory_space<vmem>>, vector<8x32xf32>,
    %c0_109 = arith.constant 0 : index
    %c32_110 = arith.constant 32 : index
    %177 = vector.load %arg7[%c0_109, %c32_110] : memref<8x64xf32, #tpu.memory_space<vmem>>, vector<8x32xf32>
    tpu.vector_store %arg7[%c0_109, %c32_110], %175 {strides = array<i32>} : memref<8x64xf32, #tpu.memory_space<vmem>>, vector<8x32xf32>,
    %c6_i32 = arith.constant 6 : i32
    %178 = arith.index_cast %c6_i32 : i32 to index
    %c0_111 = arith.constant 0 : index
    %c0_112 = arith.constant 0 : index
    %179 = vector.load %arg1[%178, %c0_111, %c0_112] : memref<8x8x32xf32, #tpu.memory_space<vmem>>, vector<1x8x32xf32>
    %180 = vector.shape_cast %179 : vector<1x8x32xf32> to vector<8x32xf32>
    %c0_113 = arith.constant 0 : index
    %c0_114 = arith.constant 0 : index
    %181 = vector.load %arg7[%c0_113, %c0_114] : memref<8x64xf32, #tpu.memory_space<vmem>>, vector<8x32xf32>
    tpu.vector_store %arg7[%c0_113, %c0_114], %180 {strides = array<i32>} : memref<8x64xf32, #tpu.memory_space<vmem>>, vector<8x32xf32>,
    %c0_115 = arith.constant 0 : index
    %c0_116 = arith.constant 0 : index
    %182 = vector.load %arg7[%c0_115, %c0_116] : memref<8x64xf32, #tpu.memory_space<vmem>>, vector<8x64xf32>
    %c0_117 = arith.constant 0 : index
    %c0_118 = arith.constant 0 : index
    %183 = vector.load %arg2[%c0_117, %c0_118] : memref<64x128xf32, #tpu.memory_space<vmem>>, vector<64x128xf32>
    %cst_119 = arith.constant dense<0.000000e+00> : vector<8x128xf32>
    %184 = tpu.matmul %182, %183, %cst_119 {dimension_numbers = #tpu.dot_dimension_numbers<[1], [0], [0], [1], [0, 0, 1, 1], [], []>} : vector<8x64xf32>, vector<64x128xf32>, vector<8x128xf32> -> vector<8x128xf32>
    %c0_120 = arith.constant 0 : index
    %c0_121 = arith.constant 0 : index
    %185 = vector.load %arg3[%c0_120, %c0_121] : memref<1x128xf32, #tpu.memory_space<vmem>>, vector<1x128xf32>
    %186 = vector.broadcast %185 : vector<1x128xf32> to vector<8x128xf32>
    %187 = arith.addf %184, %186 : vector<8x128xf32>
    %188 = vector.extract_strided_slice %187 {offsets = [0, 0], sizes = [8, 96], strides = [1, 1]} : vector<8x128xf32> to vector<8x96xf32>
    %189 = arith.negf %188 : vector<8x96xf32>
    %190 = math.exp %189 : vector<8x96xf32>
    %cst_122 = arith.constant 1.000000e+00 : f32
    %191 = vector.broadcast %cst_122 : f32 to vector<8x96xf32>
    %192 = arith.addf %191, %190 : vector<8x96xf32>
    %193 = arith.divf %191, %192 : vector<8x96xf32>
    %194 = vector.extract_strided_slice %187 {offsets = [0, 96], sizes = [8, 32], strides = [1, 1]} : vector<8x128xf32> to vector<8x32xf32>
    %195 = math.tanh %194 : vector<8x32xf32>
    %196 = vector.extract_strided_slice %193 {offsets = [0, 0], sizes = [8, 32], strides = [1, 1]} : vector<8x96xf32> to vector<8x32xf32>
    %197 = vector.extract_strided_slice %193 {offsets = [0, 32], sizes = [8, 32], strides = [1, 1]} : vector<8x96xf32> to vector<8x32xf32>
    %198 = vector.extract_strided_slice %193 {offsets = [0, 64], sizes = [8, 32], strides = [1, 1]} : vector<8x96xf32> to vector<8x32xf32>
    %c0_123 = arith.constant 0 : index
    %c0_124 = arith.constant 0 : index
    %199 = vector.load %arg8[%c0_123, %c0_124] : memref<8x32xf32, #tpu.memory_space<vmem>>, vector<8x32xf32>
    %200 = arith.mulf %197, %199 : vector<8x32xf32>
    %201 = arith.mulf %196, %195 : vector<8x32xf32>
    %202 = arith.addf %200, %201 : vector<8x32xf32>
    %203 = math.tanh %202 : vector<8x32xf32>
    %204 = arith.mulf %198, %203 : vector<8x32xf32>
    %c0_125 = arith.constant 0 : index
    %c0_126 = arith.constant 0 : index
    %205 = vector.load %arg8[%c0_125, %c0_126] : memref<8x32xf32, #tpu.memory_space<vmem>>, vector<8x32xf32>
    tpu.vector_store %arg8[%c0_125, %c0_126], %202 {strides = array<i32>} : memref<8x32xf32, #tpu.memory_space<vmem>>, vector<8x32xf32>,
    %c0_127 = arith.constant 0 : index
    %c32_128 = arith.constant 32 : index
    %206 = vector.load %arg7[%c0_127, %c32_128] : memref<8x64xf32, #tpu.memory_space<vmem>>, vector<8x32xf32>
    tpu.vector_store %arg7[%c0_127, %c32_128], %204 {strides = array<i32>} : memref<8x64xf32, #tpu.memory_space<vmem>>, vector<8x32xf32>,
    %c7_i32 = arith.constant 7 : i32
    %207 = arith.index_cast %c7_i32 : i32 to index
    %c0_129 = arith.constant 0 : index
    %c0_130 = arith.constant 0 : index
    %208 = vector.load %arg1[%207, %c0_129, %c0_130] : memref<8x8x32xf32, #tpu.memory_space<vmem>>, vector<1x8x32xf32>
    %209 = vector.shape_cast %208 : vector<1x8x32xf32> to vector<8x32xf32>
    %c0_131 = arith.constant 0 : index
    %c0_132 = arith.constant 0 : index
    %210 = vector.load %arg7[%c0_131, %c0_132] : memref<8x64xf32, #tpu.memory_space<vmem>>, vector<8x32xf32>
    tpu.vector_store %arg7[%c0_131, %c0_132], %209 {strides = array<i32>} : memref<8x64xf32, #tpu.memory_space<vmem>>, vector<8x32xf32>,
    %c0_133 = arith.constant 0 : index
    %c0_134 = arith.constant 0 : index
    %211 = vector.load %arg7[%c0_133, %c0_134] : memref<8x64xf32, #tpu.memory_space<vmem>>, vector<8x64xf32>
    %c0_135 = arith.constant 0 : index
    %c0_136 = arith.constant 0 : index
    %212 = vector.load %arg2[%c0_135, %c0_136] : memref<64x128xf32, #tpu.memory_space<vmem>>, vector<64x128xf32>
    %cst_137 = arith.constant dense<0.000000e+00> : vector<8x128xf32>
    %213 = tpu.matmul %211, %212, %cst_137 {dimension_numbers = #tpu.dot_dimension_numbers<[1], [0], [0], [1], [0, 0, 1, 1], [], []>} : vector<8x64xf32>, vector<64x128xf32>, vector<8x128xf32> -> vector<8x128xf32>
    %c0_138 = arith.constant 0 : index
    %c0_139 = arith.constant 0 : index
    %214 = vector.load %arg3[%c0_138, %c0_139] : memref<1x128xf32, #tpu.memory_space<vmem>>, vector<1x128xf32>
    %215 = vector.broadcast %214 : vector<1x128xf32> to vector<8x128xf32>
    %216 = arith.addf %213, %215 : vector<8x128xf32>
    %217 = vector.extract_strided_slice %216 {offsets = [0, 0], sizes = [8, 96], strides = [1, 1]} : vector<8x128xf32> to vector<8x96xf32>
    %218 = arith.negf %217 : vector<8x96xf32>
    %219 = math.exp %218 : vector<8x96xf32>
    %cst_140 = arith.constant 1.000000e+00 : f32
    %220 = vector.broadcast %cst_140 : f32 to vector<8x96xf32>
    %221 = arith.addf %220, %219 : vector<8x96xf32>
    %222 = arith.divf %220, %221 : vector<8x96xf32>
    %223 = vector.extract_strided_slice %216 {offsets = [0, 96], sizes = [8, 32], strides = [1, 1]} : vector<8x128xf32> to vector<8x32xf32>
    %224 = math.tanh %223 : vector<8x32xf32>
    %225 = vector.extract_strided_slice %222 {offsets = [0, 0], sizes = [8, 32], strides = [1, 1]} : vector<8x96xf32> to vector<8x32xf32>
    %226 = vector.extract_strided_slice %222 {offsets = [0, 32], sizes = [8, 32], strides = [1, 1]} : vector<8x96xf32> to vector<8x32xf32>
    %227 = vector.extract_strided_slice %222 {offsets = [0, 64], sizes = [8, 32], strides = [1, 1]} : vector<8x96xf32> to vector<8x32xf32>
    %c0_141 = arith.constant 0 : index
    %c0_142 = arith.constant 0 : index
    %228 = vector.load %arg8[%c0_141, %c0_142] : memref<8x32xf32, #tpu.memory_space<vmem>>, vector<8x32xf32>
    %229 = arith.mulf %226, %228 : vector<8x32xf32>
    %230 = arith.mulf %225, %224 : vector<8x32xf32>
    %231 = arith.addf %229, %230 : vector<8x32xf32>
    %232 = math.tanh %231 : vector<8x32xf32>
    %233 = arith.mulf %227, %232 : vector<8x32xf32>
    %c0_143 = arith.constant 0 : index
    %c0_144 = arith.constant 0 : index
    %234 = vector.load %arg8[%c0_143, %c0_144] : memref<8x32xf32, #tpu.memory_space<vmem>>, vector<8x32xf32>
    tpu.vector_store %arg8[%c0_143, %c0_144], %231 {strides = array<i32>} : memref<8x32xf32, #tpu.memory_space<vmem>>, vector<8x32xf32>,
    %c0_145 = arith.constant 0 : index
    %c32_146 = arith.constant 32 : index
    %235 = vector.load %arg7[%c0_145, %c32_146] : memref<8x64xf32, #tpu.memory_space<vmem>>, vector<8x32xf32>
    tpu.vector_store %arg7[%c0_145, %c32_146], %233 {strides = array<i32>} : memref<8x64xf32, #tpu.memory_space<vmem>>, vector<8x32xf32>,
    %c8_i32 = arith.constant 8 : i32
    %c0_147 = arith.constant 0 : index
    %c32_148 = arith.constant 32 : index
    %236 = vector.load %arg7[%c0_147, %c32_148] : memref<8x64xf32, #tpu.memory_space<vmem>>, vector<8x32xf32>
    %c0_149 = arith.constant 0 : index
    %c0_150 = arith.constant 0 : index
    %237 = vector.load %arg4[%c0_149, %c0_150] : memref<32x128xf32, #tpu.memory_space<vmem>>, vector<32x128xf32>
    %cst_151 = arith.constant dense<0.000000e+00> : vector<8x128xf32>
    %238 = tpu.matmul %236, %237, %cst_151 {dimension_numbers = #tpu.dot_dimension_numbers<[1], [0], [0], [1], [0, 0, 1, 1], [], []>} : vector<8x32xf32>, vector<32x128xf32>, vector<8x128xf32> -> vector<8x128xf32>
    %c0_152 = arith.constant 0 : index
    %c0_153 = arith.constant 0 : index
    %239 = vector.load %arg5[%c0_152, %c0_153] : memref<1x128xf32, #tpu.memory_space<vmem>>, vector<1x128xf32>
    %240 = vector.broadcast %239 : vector<1x128xf32> to vector<8x128xf32>
    %241 = arith.addf %238, %240 : vector<8x128xf32>
    %c0_154 = arith.constant 0 : index
    %c0_155 = arith.constant 0 : index
    %242 = vector.load %arg6[%c0_154, %c0_155] : memref<8x128xf32, #tpu.memory_space<vmem>>, vector<8x128xf32>
    tpu.vector_store %arg6[%c0_154, %c0_155], %241 {strides = array<i32>} : memref<8x128xf32, #tpu.memory_space<vmem>>, vector<8x128xf32>,
    return
  }
  func.func @transform_0(%arg0: i32) -> (i32, i32, i32) {
    %c0_i32 = arith.constant 0 : i32
    %c0_i32_0 = arith.constant 0 : i32
    %c0_i32_1 = arith.constant 0 : i32
    %c0_i32_2 = arith.constant 0 : i32
    return %c0_i32, %c0_i32_0, %c0_i32_1 : i32, i32, i32
  }
  func.func @transform_1(%arg0: i32) -> (i32, i32) {
    %c0_i32 = arith.constant 0 : i32
    %c0_i32_0 = arith.constant 0 : i32
    %c0_i32_1 = arith.constant 0 : i32
    return %c0_i32, %c0_i32_0 : i32, i32
  }
  func.func @transform_2(%arg0: i32) -> (i32, i32) {
    %c0_i32 = arith.constant 0 : i32
    %c0_i32_0 = arith.constant 0 : i32
    %c0_i32_1 = arith.constant 0 : i32
    return %c0_i32, %c0_i32_0 : i32, i32
  }
  func.func @transform_3(%arg0: i32) -> (i32, i32) {
    %c0_i32 = arith.constant 0 : i32
    %c0_i32_0 = arith.constant 0 : i32
    %c0_i32_1 = arith.constant 0 : i32
    return %c0_i32, %c0_i32_0 : i32, i32
  }
  func.func @transform_4(%arg0: i32) -> (i32, i32) {
    %c0_i32 = arith.constant 0 : i32
    %c0_i32_0 = arith.constant 0 : i32
    %c0_i32_1 = arith.constant 0 : i32
    return %c0_i32, %c0_i32_0 : i32, i32
  }
  func.func @transform_5(%arg0: i32) -> (i32, i32) {
    %c0_i32 = arith.constant 0 : i32
    %c0_i32_0 = arith.constant 0 : i32
    %c0_i32_1 = arith.constant 0 : i32
    return %c0_i32, %c0_i32_0 : i32, i32
  }
}

</mosaic_0001>

<bundles_post_ra>
// kernel: tpu_custom_call.1
= control target key start
LH: loop header
LB: loop body
LE: loop exit
PB: predicated region body
PF: predicated region fallthrough
CT: control target
= control target key end

     0   :  { %10 = vsyncpa [#allocation5], 0  ;;  %s2054_s0 = inlined_call_operand.hbm [shape: f32[8,8,32], index: 0, kind: input, shape index: {}]   ;;  %s2055_s1 = inlined_call_operand.hbm [shape: f32[64,128], index: 1, kind: input, shape index: {}]   ;;  %s2056_s2 = inlined_call_operand.vmem [shape: f32[1,128], index: 2, kind: input, shape index: {}]   ;;  %s2057_s3 = inlined_call_operand.hbm [shape: f32[32,128], index: 3, kind: input, shape index: {}]   ;;  %s2058_s4 = inlined_call_operand.vmem [shape: f32[1,128], index: 4, kind: input, shape index: {}]   ;;  %s2059_s5 = inlined_call_operand.hbm [shape: f32[8,128], index: 5, kind: output, shape index: {}]  }
   0x1   :  { %11 = vsyncpa [#allocation8], 0 }
   0x2   :  { %12 = vsyncpa [#allocation6], 0  ;;  %s1755_s18 = smov [#allocation7]   ;;  %s1756_s20 = smov [#allocation4]  }
   0x3   :  { %s30_s19 = sshll.u32 %s1755_s18, 4  ;;  %s18_s21 = sshll.u32 %s1756_s20, 4  ;;  %s31_s19 = int_to_ptr.vmem [resolvable:$true] %s30_s19  ;;  %s1796_s21 = int_to_ptr.vmem [resolvable:$true] %s18_s21 }
   0x4   :  { %s1661_s24 = scalar_lea.hbm %s2055_s1, 1024 }
   0x5   :  { %p1662_p0 = scmp.ne.s32.totalorder %s2055_s1, %s1661_s24  ;;  %p1665_p1 = scmp.lt.u32.totalorder %s1661_s24, %s2055_s1 }
   0x7   :  { %p1667_p2 = pnand %p1665_p1, %p1662_p0 }
   0x9   :  { %1670 = shalt.err (!%p1667_p2)
}
   0xa   :  { %s1671_s29 = scalar_lea.vmem %s31_s19, 1024  ;;  %p1676_p4 = scmp.lt.s32.totalorder %s31_s19, %s31_s19 }
   0xb   :  { %p1672_p3 = scmp.ne.s32.totalorder %s31_s19, %s1671_s29  ;;  %p1677_p5 = scmp.lt.s32.totalorder %s1671_s29, %s1671_s29 }
   0xd   :  { %p1678_p6 = por %p1677_p5, %p1676_p4 }
   0xf   :  { %p1679_p7 = pnand %p1678_p6, %p1672_p3 }
  0x11   :  { %1682 = shalt.err (!%p1679_p7)
}
  0x12   :  { %s1757_s30 = smov 128   ;;  %s1758_s6 = smov 8  }
  0x13   :  { %36 = dma.hbm_to_vmem [thread:$0]  %s2055_s1, 1024, %s31_s19, [#allocation8], %s1757_s30, %s1757_s30, %s1758_s6  }
  0x14   :  { %s1683_s11 = scalar_lea.hbm %s2054_s0, 1024 }
  0x15   :  { %p1684_p8 = scmp.ne.s32.totalorder %s2054_s0, %s1683_s11  ;;  %p1687_p9 = scmp.lt.u32.totalorder %s1683_s11, %s2054_s0 }
  0x17   :  { %p1689_p10 = pnand %p1687_p9, %p1684_p8 }
  0x19   :  { %1692 = shalt.err (!%p1689_p10)
}
  0x1a   :  { %s1693_s16 = scalar_lea.vmem %s1796_s21, 1024  ;;  %p1698_p12 = scmp.lt.s32.totalorder %s1796_s21, %s1796_s21 }
  0x1b   :  { %p1694_p11 = scmp.ne.s32.totalorder %s1796_s21, %s1693_s16  ;;  %p1699_p13 = scmp.lt.s32.totalorder %s1693_s16, %s1693_s16 }
  0x1d   :  { %p1700_p0 = por %p1699_p13, %p1698_p12 }
  0x1f   :  { %p1701_p1 = pnand %p1700_p0, %p1694_p11 }
  0x21   :  { %1704 = shalt.err (!%p1701_p1)
}
  0x22   :  { %24 = dma.hbm_to_vmem [thread:$0]  %s2054_s0, 1024, %s1796_s21, [#allocation5], %s1757_s30, %s1757_s30, %s1758_s6  }
  0x23   :  { %s1759_s18 = smov [#allocation9]   ;;  %s1705_s23 = scalar_lea.hbm %s2057_s3, 512 }
  0x24   :  { %s44_s19 = sshll.u32 %s1759_s18, 4  ;;  %p1706_p2 = scmp.ne.s32.totalorder %s2057_s3, %s1705_s23  ;;  %s45_s19 = int_to_ptr.vmem [resolvable:$true] %s44_s19 }
  0x25   :  { %p1709_p3 = scmp.lt.u32.totalorder %s1705_s23, %s2057_s3 }
  0x27   :  { %p1711_p4 = pnand %p1709_p3, %p1706_p2 }
  0x29   :  { %1714 = shalt.err (!%p1711_p4)
}
  0x2a   :  { %s1715_s28 = scalar_lea.vmem %s45_s19, 512  ;;  %p1720_p6 = scmp.lt.s32.totalorder %s45_s19, %s45_s19 }
  0x2b   :  { %p1716_p5 = scmp.ne.s32.totalorder %s45_s19, %s1715_s28  ;;  %p1721_p7 = scmp.lt.s32.totalorder %s1715_s28, %s1715_s28 }
  0x2d   :  { %p1722_p8 = por %p1721_p7, %p1720_p6 }
  0x2f   :  { %p1723_p9 = pnand %p1722_p8, %p1716_p5 }
  0x31   :  { %1726 = shalt.err (!%p1723_p9)
}
  0x32   :  { %50 = dma.hbm_to_vmem [thread:$0]  %s2057_s3, 512, %s45_s19, [#allocation8], %s1757_s30, %s1757_s30, %s1758_s6  }
  0x33   :  { %1749 = dma.done.wait [#allocation5], 1024  }
  0x34   :  { %1750 = vsyncadd [#allocation5], 4294966272 }
  0x35   :  { %1751 = dma.done.wait [#allocation8], 1536  }
  0x36   :  { %1752 = vsyncadd [#allocation8], 4294965760  ;;  %vm62_vm0 = vcmask 523264   ;;  %v1760_v0 = vmov 0.0|0.0   ;;  %vm1761_vm1 = vmmov 0   ;;  %v1762_v1 = vmov 0.0  }
  0x37   :  { %1484 = vmatprep.subr.bf16.mxu0 %v1760_v0  ;;  %1337 = vmatprep.mubr.msk.f32.mxu0 %vm1761_vm1, %v1762_v1  ;;  %63 = vst.msk [vmem:[#allocation2] sm:$0xff] %vm62_vm0, %v1762_v1  ;;  %vm64_vm2 = vcmask 261120   ;;  %v69_v2 = vld [vmem:[#allocation7] sm:$0xff]  ;;  %v70_v3 = vld [vmem:[#allocation7 + $0x8] sm:$0xff]  ;;  %v71_v4 = vld [vmem:[#allocation7 + $0x10] sm:$0xff]  ;;  %s1763_s30 = smov 32  }
  0x38   :  { %65 = vst.msk [vmem:[#allocation3] sm:$0xff] %vm64_vm2, %v1762_v1  ;;  %1496 = vmatprep.subr.bf16.mxu1 %v1760_v0  ;;  %1356 = vmatprep.mubr.msk.f32.mxu1 %vm1761_vm1, %v1762_v1  ;;  %v1858_v5 = vpack.c.bf16 %v70_v3, %v69_v2  ;;  %v72_v6 = vld [vmem:[#allocation7 + $0x18] sm:$0xff]  ;;  %v66_v7 = vld [vmem:[#allocation4] sm:$0xff]  ;;  %v74_v10 = vld [vmem:[#allocation7 + $0x28] sm:$0xff]  ;;  %vm195_vm3 = vcmask 523520   ;;  %s1765_s8 = smov [#allocation10]  }
  0x39   :  { %v1861_v8 = vpack.c.bf16 %v72_v6, %v71_v4  ;;  %67 = vst.msk [vmem:[#allocation2] sm:$0xff] %vm64_vm2, %v66_v7  ;;  %v73_v9 = vld [vmem:[#allocation7 + $0x20] sm:$0xff]  ;;  %v75_v12 = vld [vmem:[#allocation7 + $0x30] sm:$0xff]  ;;  %v76_v13 = vld [vmem:[#allocation7 + $0x38] sm:$0xff]  ;;  %s1208_s9 = sshll.u32 %s1765_s8, 4  ;;  %s1209_s9 = int_to_ptr.vmem [resolvable:$true] %s1208_s9 }
  0x3a   :  { %1486 = vmatpush3.bf16.msra.mxu0 %v1858_v5  ;;  %1498 = vmatpush3.bf16.msra.mxu1 %v1858_v5  ;;  %v1868_v11 = vpack.c.bf16 %v74_v10, %v73_v9  ;;  %v1874_v14 = vpack.c.bf16 %v76_v13, %v75_v12  ;;  %v1897_v16 = vld [vmem:[%s2056_s2] ss:$0 sm:$0xff]  ;;  %s1764_s2 = smov 96   ;;  %v198_v37 = vld [vmem:[#allocation4 + $0x8] sm:$0xff]  ;;  %s1727_s10 = scalar_lea.vmem %s1209_s9, 128 }
  0x3b   :  { %1487 = vmatprep.subr.bf16.mxu0 %v1760_v0  ;;  %1499 = vmatprep.subr.bf16.mxu1 %v1760_v0  ;;  %v329_v59 = vld [vmem:[#allocation4 + $0x10] sm:$0xff]  ;;  %p1728_p10 = scmp.ne.s32.totalorder %s1209_s9, %s1727_s10  ;;  %p1732_p11 = scmp.lt.s32.totalorder %s1209_s9, %s1209_s9 }
  0x3c   :  { %p1733_p12 = scmp.lt.s32.totalorder %s1727_s10, %s1727_s10 }
  0x3e   :  { %1489 = vmatpush3.bf16.msra.mxu0 %v1861_v8  ;;  %1501 = vmatpush3.bf16.msra.mxu1 %v1861_v8  ;;  %p1734_p13 = por %p1733_p12, %p1732_p11 }
  0x3f   :  { %1490 = vmatprep.subr.bf16.mxu0 %v1760_v0  ;;  %1502 = vmatprep.subr.bf16.mxu1 %v1760_v0  ;;  %v164_v21 = vld [vmem:[#allocation3] sm:$0xff] }
  0x40   :  { %v68_v15 = vld [vmem:[#allocation2] sm:$0xff]  ;;  %p1735_p0 = pnand %p1734_p13, %p1728_p10 }
  0x42   :  { %1492 = vmatpush3.bf16.msra.mxu0 %v1868_v11  ;;  %1504 = vmatpush3.bf16.msra.mxu1 %v1868_v11 }
  0x43   :  { %1493 = vmatprep.subr.bf16.mxu0 %v1760_v0  ;;  %1505 = vmatprep.subr.bf16.mxu1 %v1760_v0 }
  0x46   :  { %1495 = vmatpush3.bf16.msra.mxu0 %v1874_v14  ;;  %1507 = vmatpush3.bf16.msra.mxu1 %v1874_v14 }
  0x47   :  { %1508 = vmatprep.subr.bf16.mxu0 %v1760_v0  ;;  %1520 = vmatprep.subr.bf16.mxu1 %v1760_v0 }
  0x49   :  { %1338 = vmatmul.mubr.msk.f32.vlgmr.msra.gmra.mrb[0].mxu0 %vm62_vm0, %v68_v15 }
  0x4a   :  { %1510 = vmatpush3.bf16.msra.mxu0 %v1858_v5  ;;  %1375 = vmatprep.mubr.msk.f32.mxu0 %vm1761_vm1, %v1762_v1 }
  0x4b   :  { %1511 = vmatprep.subr.bf16.mxu0 %v1760_v0 }
  0x4e   :  { %1513 = vmatpush3.bf16.msra.mxu0 %v1861_v8 }
  0x4f   :  { %1514 = vmatprep.subr.bf16.mxu0 %v1760_v0 }
  0x52   :  { %1516 = vmatpush3.bf16.msra.mxu0 %v1868_v11 }
  0x53   :  { %1517 = vmatprep.subr.bf16.mxu0 %v1760_v0 }
  0x56   :  { %1519 = vmatpush3.bf16.msra.mxu0 %v1874_v14 }
  0x57   :  { %1532 = vmatprep.subr.bf16.mxu0 %v1760_v0 }
 0x11c   :  { %v153_v17 = vpop.f32.mrb[0].mxu0 }
 0x11d   :  { %v154_v18 = vadd.f32 %v1897_v16, %v153_v17  ;;  %v1339_v19 = vpop.f32.mrb[1].mxu0 }
 0x11f   :  { %1597 = vtanh.f32 %v154_v18  ;;  %v1220_v22 = vmul.f32 -1.442695, %v154_v18 }
 0x121   :  { %1599 = vpow2.f32 %v1220_v22 }
 0x129   :  { %v1598_v20 = vpop.eup %1597 }
 0x12a   :  { %171 = vrot.lane.b32.xlu0 %v1598_v20, %s1763_s30 }
 0x12b   :  { %v1600_v23 = vpop.eup %1599 }
 0x12c   :  { %v160_v24 = vadd.f32 1.0, %v1600_v23 }
 0x12e   :  { %166 = vrot.lane.b32.xlu0 %v164_v21, %s1763_s30  ;;  %1601 = vrcp.f32 %v160_v24  ;;  %v460_v24 = vld [vmem:[#allocation4 + $0x18] sm:$0xff] }
 0x138   :  { %v1602_v25 = vpop.eup %1601 }
 0x19c   :  { %v172_v26 = vpop.permute.xlu0 %171 }
 0x19d   :  { %v174_v27 = vmul.f32 %v1602_v25, %v172_v26 }
 0x19f   :  { %176 = vrot.lane.b32.xlu1 %v174_v27, %s1763_s30 }
 0x1a0   :  { %v167_v28 = vpop.permute.xlu0 %166 }
 0x1a1   :  { %v169_v29 = vmul.f32 %v1602_v25, %v167_v28 }
 0x211   :  { %v177_v30 = vpop.permute.xlu1 %176 }
 0x212   :  { %v179_v31 = vadd.f32 %v177_v30, %v169_v29 }
 0x214   :  { %1603 = vtanh.f32 %v179_v31 }
 0x21e   :  { %v1604_v32 = vpop.eup %1603 }
 0x21f   :  { %182 = vrot.lane.b32.xlu1 %v1604_v32, %s1763_s30 }
 0x223   :  { %187 = vrot.lane.b32.xlu1 %v179_v31, %s1764_s2 }
 0x291   :  { %v183_v33 = vpop.permute.xlu1 %182 }
 0x292   :  { %v185_v34 = vmul.f32 %v1602_v25, %v183_v33 }
 0x294   :  { %192 = vrot.lane.b32.xlu0 %v185_v34, %s1764_s2 }
 0x295   :  { %v188_v35 = vpop.permute.xlu1 %187 }
 0x296   :  { %190 = vst.msk [vmem:[#allocation3] sm:$0xff] %vm64_vm2, %v188_v35 }
 0x29d   :  { %v296_v36 = vld [vmem:[#allocation3] sm:$0xff] }
 0x29e   :  { %298 = vrot.lane.b32.xlu1 %v296_v36, %s1763_s30 }
 0x306   :  { %v193_v38 = vpop.permute.xlu0 %192 }
 0x307   :  { %196 = vst.msk [vmem:[#allocation2] sm:$0xff] %vm195_vm3, %v193_v38 }
 0x308   :  { %199 = vst.msk [vmem:[#allocation2] sm:$0xff] %vm64_vm2, %v198_v37 }
 0x30f   :  { %v200_v39 = vld [vmem:[#allocation2] sm:$0xff] }
 0x310   :  { %1357 = vmatmul.mubr.msk.f32.vlgmr.msra.gmra.mrb[0].mxu1 %vm62_vm0, %v200_v39  ;;  %v299_v50 = vpop.permute.xlu1 %298 }
 0x311   :  { %1522 = vmatpush3.bf16.msra.mxu1 %v1858_v5  ;;  %1394 = vmatprep.mubr.msk.f32.mxu1 %vm1761_vm1, %v1762_v1 }
 0x312   :  { %1523 = vmatprep.subr.bf16.mxu1 %v1760_v0 }
 0x315   :  { %1525 = vmatpush3.bf16.msra.mxu1 %v1861_v8 }
 0x316   :  { %1526 = vmatprep.subr.bf16.mxu1 %v1760_v0 }
 0x319   :  { %1528 = vmatpush3.bf16.msra.mxu1 %v1868_v11 }
 0x31a   :  { %1529 = vmatprep.subr.bf16.mxu1 %v1760_v0 }
 0x31d   :  { %1531 = vmatpush3.bf16.msra.mxu1 %v1874_v14 }
 0x31e   :  { %1544 = vmatprep.subr.bf16.mxu1 %v1760_v0 }
 0x3e3   :  { %v285_v40 = vpop.f32.mrb[0].mxu1 }
 0x3e4   :  { %v286_v41 = vadd.f32 %v1897_v16, %v285_v40  ;;  %v1358_v42 = vpop.f32.mrb[1].mxu1 }
 0x3e6   :  { %1605 = vtanh.f32 %v286_v41  ;;  %v1223_v44 = vmul.f32 -1.442695, %v286_v41 }
 0x3e8   :  { %1607 = vpow2.f32 %v1223_v44 }
 0x3f0   :  { %v1606_v43 = vpop.eup %1605 }
 0x3f1   :  { %303 = vrot.lane.b32.xlu0 %v1606_v43, %s1763_s30 }
 0x3f2   :  { %v1608_v45 = vpop.eup %1607 }
 0x3f3   :  { %v292_v46 = vadd.f32 1.0, %v1608_v45 }
 0x3f5   :  { %1609 = vrcp.f32 %v292_v46  ;;  %v591_v46 = vld [vmem:[#allocation4 + $0x20] sm:$0xff] }
 0x3ff   :  { %v1610_v47 = vpop.eup %1609 }
 0x400   :  { %v301_v51 = vmul.f32 %v1610_v47, %v299_v50 }
 0x463   :  { %v304_v48 = vpop.permute.xlu0 %303 }
 0x464   :  { %v306_v49 = vmul.f32 %v1610_v47, %v304_v48 }
 0x466   :  { %308 = vrot.lane.b32.xlu0 %v306_v49, %s1763_s30 }
 0x4d8   :  { %v309_v52 = vpop.permute.xlu0 %308 }
 0x4d9   :  { %v311_v53 = vadd.f32 %v309_v52, %v301_v51 }
 0x4db   :  { %1611 = vtanh.f32 %v311_v53 }
 0x4e5   :  { %v1612_v54 = vpop.eup %1611 }
 0x4e6   :  { %314 = vrot.lane.b32.xlu1 %v1612_v54, %s1763_s30 }
 0x4ea   :  { %319 = vrot.lane.b32.xlu1 %v311_v53, %s1764_s2 }
 0x558   :  { %v315_v55 = vpop.permute.xlu1 %314 }
 0x559   :  { %v317_v56 = vmul.f32 %v1610_v47, %v315_v55 }
 0x55b   :  { %324 = vrot.lane.b32.xlu0 %v317_v56, %s1764_s2 }
 0x55c   :  { %v320_v57 = vpop.permute.xlu1 %319 }
 0x55d   :  { %322 = vst.msk [vmem:[#allocation3] sm:$0xff] %vm64_vm2, %v320_v57 }
 0x564   :  { %v427_v58 = vld [vmem:[#allocation3] sm:$0xff] }
 0x565   :  { %429 = vrot.lane.b32.xlu1 %v427_v58, %s1763_s30 }
 0x5cd   :  { %v325_v60 = vpop.permute.xlu0 %324 }
 0x5ce   :  { %327 = vst.msk [vmem:[#allocation2] sm:$0xff] %vm195_vm3, %v325_v60 }
 0x5cf   :  { %330 = vst.msk [vmem:[#allocation2] sm:$0xff] %vm64_vm2, %v329_v59 }
 0x5d6   :  { %v331_v61 = vld [vmem:[#allocation2] sm:$0xff] }
 0x5d7   :  { %1376 = vmatmul.mubr.msk.f32.vlgmr.msra.gmra.mrb[2].mxu0 %vm62_vm0, %v331_v61  ;;  %v430_v13 = vpop.permute.xlu1 %429 }
 0x5d8   :  { %1534 = vmatpush3.bf16.msra.mxu0 %v1858_v5  ;;  %1413 = vmatprep.mubr.msk.f32.mxu0 %vm1761_vm1, %v1762_v1 }
 0x5d9   :  { %1535 = vmatprep.subr.bf16.mxu0 %v1760_v0 }
 0x5dc   :  { %1537 = vmatpush3.bf16.msra.mxu0 %v1861_v8 }
 0x5dd   :  { %1538 = vmatprep.subr.bf16.mxu0 %v1760_v0 }
 0x5e0   :  { %1540 = vmatpush3.bf16.msra.mxu0 %v1868_v11 }
 0x5e1   :  { %1541 = vmatprep.subr.bf16.mxu0 %v1760_v0 }
 0x5e4   :  { %1543 = vmatpush3.bf16.msra.mxu0 %v1874_v14 }
 0x5e5   :  { %1556 = vmatprep.subr.bf16.mxu0 %v1760_v0 }
 0x6aa   :  { %v416_v62 = vpop.f32.mrb[2].mxu0 }
 0x6ab   :  { %v417_v63 = vadd.f32 %v1897_v16, %v416_v62  ;;  %v1377_v2 = vpop.f32.mrb[3].mxu0 }
 0x6ad   :  { %1613 = vtanh.f32 %v417_v63  ;;  %v1226_v4 = vmul.f32 -1.442695, %v417_v63 }
 0x6af   :  { %1615 = vpow2.f32 %v1226_v4 }
 0x6b7   :  { %v1614_v3 = vpop.eup %1613 }
 0x6b8   :  { %434 = vrot.lane.b32.xlu0 %v1614_v3, %s1763_s30 }
 0x6b9   :  { %v1616_v6 = vpop.eup %1615 }
 0x6ba   :  { %v423_v7 = vadd.f32 1.0, %v1616_v6 }
 0x6bc   :  { %1617 = vrcp.f32 %v423_v7  ;;  %v722_v7 = vld [vmem:[#allocation4 + $0x28] sm:$0xff] }
 0x6c6   :  { %v1618_v9 = vpop.eup %1617 }
 0x6c7   :  { %v432_v15 = vmul.f32 %v1618_v9, %v430_v13 }
 0x72a   :  { %v435_v10 = vpop.permute.xlu0 %434 }
 0x72b   :  { %v437_v12 = vmul.f32 %v1618_v9, %v435_v10 }
 0x72d   :  { %439 = vrot.lane.b32.xlu0 %v437_v12, %s1763_s30 }
 0x79f   :  { %v440_v17 = vpop.permute.xlu0 %439 }
 0x7a0   :  { %v442_v18 = vadd.f32 %v440_v17, %v432_v15 }
 0x7a2   :  { %1619 = vtanh.f32 %v442_v18 }
 0x7ac   :  { %v1620_v19 = vpop.eup %1619 }
 0x7ad   :  { %445 = vrot.lane.b32.xlu1 %v1620_v19, %s1763_s30 }
 0x7b1   :  { %450 = vrot.lane.b32.xlu1 %v442_v18, %s1764_s2 }
 0x81f   :  { %v446_v20 = vpop.permute.xlu1 %445 }
 0x820   :  { %v448_v21 = vmul.f32 %v1618_v9, %v446_v20 }
 0x822   :  { %455 = vrot.lane.b32.xlu0 %v448_v21, %s1764_s2 }
 0x823   :  { %v451_v22 = vpop.permute.xlu1 %450 }
 0x824   :  { %453 = vst.msk [vmem:[#allocation3] sm:$0xff] %vm64_vm2, %v451_v22 }
 0x82b   :  { %v558_v23 = vld [vmem:[#allocation3] sm:$0xff] }
 0x82c   :  { %560 = vrot.lane.b32.xlu1 %v558_v23, %s1763_s30 }
 0x894   :  { %v456_v25 = vpop.permute.xlu0 %455 }
 0x895   :  { %458 = vst.msk [vmem:[#allocation2] sm:$0xff] %vm195_vm3, %v456_v25 }
 0x896   :  { %461 = vst.msk [vmem:[#allocation2] sm:$0xff] %vm64_vm2, %v460_v24 }
 0x89d   :  { %v462_v26 = vld [vmem:[#allocation2] sm:$0xff] }
 0x89e   :  { %1395 = vmatmul.mubr.msk.f32.vlgmr.msra.gmra.mrb[2].mxu1 %vm62_vm0, %v462_v26  ;;  %v561_v37 = vpop.permute.xlu1 %560 }
 0x89f   :  { %1546 = vmatpush3.bf16.msra.mxu1 %v1858_v5  ;;  %1432 = vmatprep.mubr.msk.f32.mxu1 %vm1761_vm1, %v1762_v1 }
 0x8a0   :  { %1547 = vmatprep.subr.bf16.mxu1 %v1760_v0 }
 0x8a3   :  { %1549 = vmatpush3.bf16.msra.mxu1 %v1861_v8 }
 0x8a4   :  { %1550 = vmatprep.subr.bf16.mxu1 %v1760_v0 }
 0x8a7   :  { %1552 = vmatpush3.bf16.msra.mxu1 %v1868_v11 }
 0x8a8   :  { %1553 = vmatprep.subr.bf16.mxu1 %v1760_v0 }
 0x8ab   :  { %1555 = vmatpush3.bf16.msra.mxu1 %v1874_v14 }
 0x8ac   :  { %1568 = vmatprep.subr.bf16.mxu1 %v1760_v0 }
 0x971   :  { %v547_v27 = vpop.f32.mrb[2].mxu1 }
 0x972   :  { %v548_v28 = vadd.f32 %v1897_v16, %v547_v27  ;;  %v1396_v29 = vpop.f32.mrb[3].mxu1 }
 0x973   :  { %v853_v29 = vld [vmem:[#allocation4 + $0x30] sm:$0xff] }
 0x974   :  { %1621 = vtanh.f32 %v548_v28  ;;  %v1229_v31 = vmul.f32 -1.442695, %v548_v28 }
 0x976   :  { %1623 = vpow2.f32 %v1229_v31 }
 0x97e   :  { %v1622_v30 = vpop.eup %1621 }
 0x97f   :  { %565 = vrot.lane.b32.xlu0 %v1622_v30, %s1763_s30 }
 0x980   :  { %v1624_v32 = vpop.eup %1623 }
 0x981   :  { %v554_v33 = vadd.f32 1.0, %v1624_v32 }
 0x983   :  { %1625 = vrcp.f32 %v554_v33 }
 0x98d   :  { %v1626_v34 = vpop.eup %1625 }
 0x98e   :  { %v563_v38 = vmul.f32 %v1626_v34, %v561_v37 }
 0x9f1   :  { %v566_v35 = vpop.permute.xlu0 %565 }
 0x9f2   :  { %v568_v36 = vmul.f32 %v1626_v34, %v566_v35 }
 0x9f4   :  { %570 = vrot.lane.b32.xlu0 %v568_v36, %s1763_s30 }
 0xa66   :  { %v571_v39 = vpop.permute.xlu0 %570 }
 0xa67   :  { %v573_v40 = vadd.f32 %v571_v39, %v563_v38 }
 0xa69   :  { %1627 = vtanh.f32 %v573_v40 }
 0xa73   :  { %v1628_v41 = vpop.eup %1627 }
 0xa74   :  { %576 = vrot.lane.b32.xlu1 %v1628_v41, %s1763_s30 }
 0xa78   :  { %581 = vrot.lane.b32.xlu1 %v573_v40, %s1764_s2 }
 0xae6   :  { %v577_v42 = vpop.permute.xlu1 %576 }
 0xae7   :  { %v579_v43 = vmul.f32 %v1626_v34, %v577_v42 }
 0xae9   :  { %586 = vrot.lane.b32.xlu0 %v579_v43, %s1764_s2 }
 0xaea   :  { %v582_v44 = vpop.permute.xlu1 %581 }
 0xaeb   :  { %584 = vst.msk [vmem:[#allocation3] sm:$0xff] %vm64_vm2, %v582_v44 }
 0xaf2   :  { %v689_v45 = vld [vmem:[#allocation3] sm:$0xff] }
 0xaf3   :  { %691 = vrot.lane.b32.xlu1 %v689_v45, %s1763_s30 }
 0xb5b   :  { %v587_v47 = vpop.permute.xlu0 %586 }
 0xb5c   :  { %589 = vst.msk [vmem:[#allocation2] sm:$0xff] %vm195_vm3, %v587_v47 }
 0xb5d   :  { %592 = vst.msk [vmem:[#allocation2] sm:$0xff] %vm64_vm2, %v591_v46 }
 0xb64   :  { %v593_v48 = vld [vmem:[#allocation2] sm:$0xff] }
 0xb65   :  { %1414 = vmatmul.mubr.msk.f32.vlgmr.msra.gmra.mrb[4].mxu0 %vm62_vm0, %v593_v48  ;;  %v692_v59 = vpop.permute.xlu1 %691 }
 0xb66   :  { %1558 = vmatpush3.bf16.msra.mxu0 %v1858_v5  ;;  %1451 = vmatprep.mubr.msk.f32.mxu0 %vm1761_vm1, %v1762_v1 }
 0xb67   :  { %1559 = vmatprep.subr.bf16.mxu0 %v1760_v0 }
 0xb6a   :  { %1561 = vmatpush3.bf16.msra.mxu0 %v1861_v8 }
 0xb6b   :  { %1562 = vmatprep.subr.bf16.mxu0 %v1760_v0 }
 0xb6e   :  { %1564 = vmatpush3.bf16.msra.mxu0 %v1868_v11 }
 0xb6f   :  { %1565 = vmatprep.subr.bf16.mxu0 %v1760_v0 }
 0xb72   :  { %1567 = vmatpush3.bf16.msra.mxu0 %v1874_v14 }
 0xb73   :  { %1580 = vmatprep.subr.bf16.mxu0 %v1760_v0 }
 0xc38   :  { %v678_v49 = vpop.f32.mrb[4].mxu0 }
 0xc39   :  { %v679_v50 = vadd.f32 %v1897_v16, %v678_v49  ;;  %v1415_v51 = vpop.f32.mrb[5].mxu0 }
 0xc3b   :  { %1629 = vtanh.f32 %v679_v50  ;;  %v1232_v53 = vmul.f32 -1.442695, %v679_v50  ;;  %v984_v50 = vld [vmem:[#allocation4 + $0x38] sm:$0xff] }
 0xc3d   :  { %1631 = vpow2.f32 %v1232_v53 }
 0xc45   :  { %v1630_v52 = vpop.eup %1629 }
 0xc46   :  { %696 = vrot.lane.b32.xlu0 %v1630_v52, %s1763_s30 }
 0xc47   :  { %v1632_v54 = vpop.eup %1631 }
 0xc48   :  { %v685_v55 = vadd.f32 1.0, %v1632_v54 }
 0xc4a   :  { %1633 = vrcp.f32 %v685_v55 }
 0xc54   :  { %v1634_v56 = vpop.eup %1633 }
 0xc55   :  { %v694_v60 = vmul.f32 %v1634_v56, %v692_v59 }
 0xcb8   :  { %v697_v57 = vpop.permute.xlu0 %696 }
 0xcb9   :  { %v699_v58 = vmul.f32 %v1634_v56, %v697_v57 }
 0xcbb   :  { %701 = vrot.lane.b32.xlu0 %v699_v58, %s1763_s30 }
 0xd2d   :  { %v702_v61 = vpop.permute.xlu0 %701 }
 0xd2e   :  { %v704_v62 = vadd.f32 %v702_v61, %v694_v60 }
 0xd30   :  { %1635 = vtanh.f32 %v704_v62 }
 0xd3a   :  { %v1636_v63 = vpop.eup %1635 }
 0xd3b   :  { %707 = vrot.lane.b32.xlu1 %v1636_v63, %s1763_s30 }
 0xd3f   :  { %712 = vrot.lane.b32.xlu1 %v704_v62, %s1764_s2 }
 0xdad   :  { %v708_v2 = vpop.permute.xlu1 %707 }
 0xdae   :  { %v710_v3 = vmul.f32 %v1634_v56, %v708_v2 }
 0xdb0   :  { %717 = vrot.lane.b32.xlu0 %v710_v3, %s1764_s2 }
 0xdb1   :  { %v713_v4 = vpop.permute.xlu1 %712 }
 0xdb2   :  { %715 = vst.msk [vmem:[#allocation3] sm:$0xff] %vm64_vm2, %v713_v4 }
 0xdb9   :  { %v820_v6 = vld [vmem:[#allocation3] sm:$0xff] }
 0xdba   :  { %822 = vrot.lane.b32.xlu1 %v820_v6, %s1763_s30  ;;  %v1115_v6 = vld [vmem:[#allocation9] sm:$0xff] }
 0xe22   :  { %v718_v9 = vpop.permute.xlu0 %717 }
 0xe23   :  { %720 = vst.msk [vmem:[#allocation2] sm:$0xff] %vm195_vm3, %v718_v9  ;;  %v1117_v9 = vld [vmem:[#allocation9 + $0x10] sm:$0xff] }
 0xe24   :  { %723 = vst.msk [vmem:[#allocation2] sm:$0xff] %vm64_vm2, %v722_v7  ;;  %v1116_v7 = vld [vmem:[#allocation9 + $0x8] sm:$0xff] }
 0xe2b   :  { %v724_v10 = vld [vmem:[#allocation2] sm:$0xff] }
 0xe2c   :  { %1433 = vmatmul.mubr.msk.f32.vlgmr.msra.gmra.mrb[4].mxu1 %vm62_vm0, %v724_v10  ;;  %v823_v21 = vpop.permute.xlu1 %822  ;;  %v1581_v10 = vpack.c.bf16 %v1116_v7, %v1115_v6 }
 0xe2d   :  { %1570 = vmatpush3.bf16.msra.mxu1 %v1858_v5  ;;  %1470 = vmatprep.mubr.msk.f32.mxu1 %vm1761_vm1, %v1762_v1 }
 0xe2e   :  { %1571 = vmatprep.subr.bf16.mxu1 %v1760_v0 }
 0xe31   :  { %1573 = vmatpush3.bf16.msra.mxu1 %v1861_v8 }
 0xe32   :  { %1574 = vmatprep.subr.bf16.mxu1 %v1760_v0 }
 0xe35   :  { %1576 = vmatpush3.bf16.msra.mxu1 %v1868_v11 }
 0xe36   :  { %1577 = vmatprep.subr.bf16.mxu1 %v1760_v0 }
 0xe39   :  { %1579 = vmatpush3.bf16.msra.mxu1 %v1874_v14 }
 0xeff   :  { %v809_v12 = vpop.f32.mrb[4].mxu1 }
 0xf00   :  { %v810_v13 = vadd.f32 %v1897_v16, %v809_v12  ;;  %v1434_v15 = vpop.f32.mrb[5].mxu1  ;;  %v1118_v12 = vld [vmem:[#allocation9 + $0x18] sm:$0xff] }
 0xf02   :  { %1637 = vtanh.f32 %v810_v13  ;;  %v1235_v17 = vmul.f32 -1.442695, %v810_v13 }
 0xf04   :  { %1639 = vpow2.f32 %v1235_v17 }
 0xf0c   :  { %v1638_v5 = vpop.eup %1637 }
 0xf0d   :  { %827 = vrot.lane.b32.xlu0 %v1638_v5, %s1763_s30  ;;  %v1584_v5 = vpack.c.bf16 %v1118_v12, %v1117_v9 }
 0xf0e   :  { %v1640_v18 = vpop.eup %1639 }
 0xf0f   :  { %v816_v8 = vadd.f32 1.0, %v1640_v18 }
 0xf11   :  { %1641 = vrcp.f32 %v816_v8 }
 0xf1b   :  { %v1642_v19 = vpop.eup %1641 }
 0xf1c   :  { %v825_v14 = vmul.f32 %v1642_v19, %v823_v21 }
 0xf7f   :  { %v828_v20 = vpop.permute.xlu0 %827 }
 0xf80   :  { %v830_v11 = vmul.f32 %v1642_v19, %v828_v20 }
 0xf82   :  { %832 = vrot.lane.b32.xlu0 %v830_v11, %s1763_s30 }
 0xff4   :  { %v833_v22 = vpop.permute.xlu0 %832 }
 0xff5   :  { %v835_v23 = vadd.f32 %v833_v22, %v825_v14 }
 0xff7   :  { %1643 = vtanh.f32 %v835_v23 }
0x1001   :  { %v1644_v24 = vpop.eup %1643 }
0x1002   :  { %838 = vrot.lane.b32.xlu1 %v1644_v24, %s1763_s30 }
0x1006   :  { %843 = vrot.lane.b32.xlu1 %v835_v23, %s1764_s2 }
0x1074   :  { %v839_v25 = vpop.permute.xlu1 %838 }
0x1075   :  { %v841_v26 = vmul.f32 %v1642_v19, %v839_v25 }
0x1077   :  { %848 = vrot.lane.b32.xlu0 %v841_v26, %s1764_s2 }
0x1078   :  { %v844_v27 = vpop.permute.xlu1 %843 }
0x1079   :  { %846 = vst.msk [vmem:[#allocation3] sm:$0xff] %vm64_vm2, %v844_v27 }
0x1080   :  { %v951_v28 = vld [vmem:[#allocation3] sm:$0xff] }
0x1081   :  { %953 = vrot.lane.b32.xlu1 %v951_v28, %s1763_s30 }
0x10e9   :  { %v849_v30 = vpop.permute.xlu0 %848 }
0x10ea   :  { %851 = vst.msk [vmem:[#allocation2] sm:$0xff] %vm195_vm3, %v849_v30 }
0x10eb   :  { %854 = vst.msk [vmem:[#allocation2] sm:$0xff] %vm64_vm2, %v853_v29 }
0x10f2   :  { %v855_v31 = vld [vmem:[#allocation2] sm:$0xff] }
0x10f3   :  { %1452 = vmatmul.mubr.msk.f32.vlgmr.msra.gmra.mrb[6].mxu0 %vm62_vm0, %v855_v31  ;;  %v954_v42 = vpop.permute.xlu1 %953 }
0x10f4   :  { %1481 = vmatprep.mubr.msk.f32.mxu0 %vm1761_vm1, %v1762_v1  ;;  %1582 = vmatpush3.bf16.msra.mxu0 %v1581_v10 }
0x10f5   :  { %1583 = vmatprep.subr.bf16.mxu0 %v1760_v0  ;;  %v1242_v0 = vld [vmem:[%s2058_s4] ss:$0 sm:$0xff] }
0x10f8   :  { %1585 = vmatpush3.bf16.msra.mxu0 %v1584_v5 }
0x11c6   :  { %v940_v32 = vpop.f32.mrb[6].mxu0 }
0x11c7   :  { %v941_v33 = vadd.f32 %v1897_v16, %v940_v32  ;;  %v1453_v34 = vpop.f32.mrb[7].mxu0 }
0x11c9   :  { %1645 = vtanh.f32 %v941_v33  ;;  %v1238_v36 = vmul.f32 -1.442695, %v941_v33 }
0x11cb   :  { %1647 = vpow2.f32 %v1238_v36 }
0x11d3   :  { %v1646_v35 = vpop.eup %1645 }
0x11d4   :  { %958 = vrot.lane.b32.xlu0 %v1646_v35, %s1763_s30 }
0x11d5   :  { %v1648_v37 = vpop.eup %1647 }
0x11d6   :  { %v947_v38 = vadd.f32 1.0, %v1648_v37 }
0x11d8   :  { %1649 = vrcp.f32 %v947_v38 }
0x11e2   :  { %v1650_v39 = vpop.eup %1649 }
0x11e3   :  { %v956_v1 = vmul.f32 %v1650_v39, %v954_v42 }
0x1246   :  { %v959_v40 = vpop.permute.xlu0 %958 }
0x1247   :  { %v961_v41 = vmul.f32 %v1650_v39, %v959_v40 }
0x1249   :  { %963 = vrot.lane.b32.xlu0 %v961_v41, %s1763_s30 }
0x12bb   :  { %v964_v43 = vpop.permute.xlu0 %963 }
0x12bc   :  { %v966_v44 = vadd.f32 %v964_v43, %v956_v1 }
0x12be   :  { %1651 = vtanh.f32 %v966_v44 }
0x12c8   :  { %v1652_v45 = vpop.eup %1651 }
0x12c9   :  { %969 = vrot.lane.b32.xlu1 %v1652_v45, %s1763_s30 }
0x12cd   :  { %974 = vrot.lane.b32.xlu1 %v966_v44, %s1764_s2 }
0x133b   :  { %v970_v46 = vpop.permute.xlu1 %969 }
0x133c   :  { %v972_v47 = vmul.f32 %v1650_v39, %v970_v46 }
0x133e   :  { %979 = vrot.lane.b32.xlu0 %v972_v47, %s1764_s2 }
0x133f   :  { %v975_v48 = vpop.permute.xlu1 %974 }
0x1340   :  { %977 = vst.msk [vmem:[#allocation3] sm:$0xff] %vm64_vm2, %v975_v48 }
0x1347   :  { %v1082_v49 = vld [vmem:[#allocation3] sm:$0xff] }
0x1348   :  { %1084 = vrot.lane.b32.xlu1 %v1082_v49, %s1763_s30 }
0x13b0   :  { %v980_v51 = vpop.permute.xlu0 %979 }
0x13b1   :  { %982 = vst.msk [vmem:[#allocation2] sm:$0xff] %vm195_vm3, %v980_v51 }
0x13b2   :  { %985 = vst.msk [vmem:[#allocation2] sm:$0xff] %vm64_vm2, %v984_v50 }
0x13b9   :  { %v986_v52 = vld [vmem:[#allocation2] sm:$0xff] }
0x13ba   :  { %1471 = vmatmul.mubr.msk.f32.vlgmr.msra.gmra.mrb[6].mxu1 %vm62_vm0, %v986_v52  ;;  %v1085_v63 = vpop.permute.xlu1 %1084 }
0x148d   :  { %v1071_v53 = vpop.f32.mrb[6].mxu1 }
0x148e   :  { %v1072_v54 = vadd.f32 %v1897_v16, %v1071_v53  ;;  %v1472_v55 = vpop.f32.mrb[7].mxu1 }
0x1490   :  { %1653 = vtanh.f32 %v1072_v54  ;;  %v1241_v57 = vmul.f32 -1.442695, %v1072_v54 }
0x1492   :  { %1655 = vpow2.f32 %v1241_v57 }
0x149a   :  { %v1654_v56 = vpop.eup %1653 }
0x149b   :  { %1089 = vrot.lane.b32.xlu0 %v1654_v56, %s1763_s30 }
0x149c   :  { %v1656_v58 = vpop.eup %1655 }
0x149d   :  { %v1078_v59 = vadd.f32 1.0, %v1656_v58 }
0x149f   :  { %1657 = vrcp.f32 %v1078_v59 }
0x14a9   :  { %v1658_v60 = vpop.eup %1657 }
0x14aa   :  { %v1087_v2 = vmul.f32 %v1658_v60, %v1085_v63 }
0x150d   :  { %v1090_v61 = vpop.permute.xlu0 %1089 }
0x150e   :  { %v1092_v62 = vmul.f32 %v1658_v60, %v1090_v61 }
0x1510   :  { %1094 = vrot.lane.b32.xlu0 %v1092_v62, %s1763_s30 }
0x1582   :  { %v1095_v3 = vpop.permute.xlu0 %1094 }
0x1583   :  { %v1097_v4 = vadd.f32 %v1095_v3, %v1087_v2 }
0x1585   :  { %1659 = vtanh.f32 %v1097_v4 }
0x158f   :  { %v1660_v16 = vpop.eup %1659 }
0x1590   :  { %1100 = vrot.lane.b32.xlu1 %v1660_v16, %s1763_s30 }
0x1602   :  { %v1101_v13 = vpop.permute.xlu1 %1100 }
0x1603   :  { %v1103_v15 = vmul.f32 %v1658_v60, %v1101_v13 }
0x1605   :  { %1110 = vrot.lane.b32.xlu0 %v1103_v15, %s1764_s2 }
0x1609   :  { %1105 = vrot.lane.b32.xlu0 %v1097_v4, %s1764_s2 }
0x1677   :  { %v1111_v17 = vpop.permute.xlu0 %1110 }
0x1678   :  { %1113 = vst.msk [vmem:[#allocation2] sm:$0xff] %vm195_vm3, %v1111_v17 }
0x167b   :  { %v1106_v18 = vpop.permute.xlu0 %1105 }
0x167c   :  { %1108 = vst.msk [vmem:[#allocation3] sm:$0xff] %vm64_vm2, %v1106_v18 }
0x167f   :  { %v1114_v8 = vld [vmem:[#allocation2] sm:$0xff] }
0x1680   :  { %1127 = vrot.lane.b32.xlu1 %v1114_v8, %s1764_s2 }
0x16f2   :  { %v1128_v19 = vpop.permute.xlu1 %1127 }
0x16f3   :  { %1482 = vmatmul.mubr.msk.f32.vlgmr.msra.gmra.mrb[8].mxu0 %vm64_vm2, %v1128_v19 }
0x17c6   :  { %v1197_v20 = vpop.f32.mrb[8].mxu0 }
0x17c7   :  { %v1198_v11 = vadd.f32 %v1242_v0, %v1197_v20  ;;  %v1483_v21 = vpop.f32.mrb[9].mxu0 }
0x17c9   :  { %1201 = vst [vmem:[#allocation10] sm:$0xff] %v1198_v11 }
0x17ca   :  { %1738 = shalt.err (!%p1735_p0)
}
0x17cb   :  { %s1739_s13 = scalar_lea.hbm %s2059_s5, 128 }
0x17cc   :  { %p1740_p1 = scmp.ne.s32.totalorder %s2059_s5, %s1739_s13  ;;  %p1743_p2 = scmp.lt.u32.totalorder %s1739_s13, %s2059_s5 }
0x17ce   :  { %p1745_p3 = pnand %p1743_p2, %p1740_p1 }
0x17d0   :  { %1748 = shalt.err (!%p1745_p3)
}
0x17d1   :  { %1211 = dma.vmem_to_hbm [thread:$0]  %s1209_s9, 128, %s2059_s5, [#allocation6]  }
0x17d2   :  { %1753 = dma.done.wait [#allocation6], 128  }
0x17d3   :  { %1754 = vsyncadd [#allocation6], 4294967168 }
0x17d4   :  { %1215 = vsyncpa [#allocation5], 1 }
0x17d5   :  { %1216 = vsyncpa [#allocation8], 1 }
0x17d6   :  { %1217 = vsyncpa [#allocation6], 1 }

</bundles_post_ra>
